<compile_context>
chip_gen: v5e
topology: v5e:2x2
jax: 0.10.0
libtpu: 0.0.40
codegen_flags: <defaults>
</compile_context>

<pallas_src>
import functools

import numpy as np
import jax
import jax.numpy as jnp
from jax import lax
from jax.experimental import pallas as pl
from jax.experimental.pallas import tpu as pltpu


def _round_up(a, b):
    return (a + b - 1) // b * b


def _fgl_kernel(x_ref, m_ref, wt_ref, b_ref, o_ref, acc_ref, *, n_blk, inc, outc):
    """Fused pool-first FGL forward.

    x_ref  : (n_blk*inc, tile_inn)        batch-folded input slab (compute dtype)
    m_ref  : (tile_outn, tile_inn)        dense adjacency-weight tile (compute dtype)
    wt_ref : (outc, inc)                  W^T, f32 (grid-invariant, tiny)
    b_ref  : (outc, 1) or (outc, tile_outn)  bias, f32
    o_ref  : (n_blk, outc, tile_outn)     output block
    acc_ref: (n_blk*inc, tile_outn)       f32 accumulator scratch
    """
    k = pl.program_id(2)

    @pl.when(k == 0)
    def _init():
        acc_ref[...] = jnp.zeros_like(acc_ref)

    # acc[r, o] += sum_p X[r, p] * M[o, p]   -- the big MXU matmul (K = inn tile).
    acc_ref[...] += lax.dot_general(
        x_ref[...], m_ref[...],
        dimension_numbers=(((1,), (1,)), ((), ())),
        preferred_element_type=jnp.float32)

    @pl.when(k == pl.num_programs(2) - 1)
    def _finalize():
        t_on = acc_ref.shape[1]
        pooled = acc_ref[...].reshape(n_blk, inc, t_on)            # (n, inc, T)
        w_t = wt_ref[...].astype(jnp.float32)                      # (outc, inc)
        w_b = jnp.broadcast_to(w_t[None], (n_blk, outc, inc))      # (n, outc, inc)
        # y[n, co, o] = sum_ci W^T[co, ci] * pooled[n, ci, o]   (tiny, finalize-only)
        y = lax.dot_general(
            w_b, pooled,
            dimension_numbers=(((2,), (1,)), ((0,), (0,))),
            preferred_element_type=jnp.float32)                    # (n, outc, T)
        bias = b_ref[...].astype(jnp.float32)[None]                # (1, outc, 1|T)
        o_ref[...] = (y + bias).astype(o_ref.dtype)


def fgl_forward(x, M, W, bias, *, compute_dtype=jnp.float32,
                tile_outn=512, tile_inn=1024, target_rows=256):
    """y[n, co, o] = sum_p M[o, p] * (x @ along-channels W)[...] + bias.

    x    : (N, inc, inn)
    M    : (outn, inn)  dense adjacency-weight matrix
    W    : (inc, outc)
    bias : (outc, 1) or (outc, outn)
    returns (N, outc, outn) in x.dtype
    """
    N, inc, inn = x.shape
    outn, inn_m = M.shape
    assert inn_m == inn
    outc = W.shape[1]
    out_dtype = x.dtype

    # --- batch tile: whole batch elements per block (rows of X = bn*inc) ---
    bn = N
    if N * inc > target_rows:
        cand = max(1, target_rows // inc)
        while cand > 1 and (cand * inc) % 8 != 0:
            cand -= 1
        if (cand * inc) % 8 == 0:
            bn = cand
    n_pad = _round_up(N, bn)

    # --- 128-aligned lane / reduction tiles (defaults sized for v7x 64MiB VMEM) ---
    t_on = min(tile_outn, _round_up(outn, 128))
    t_in = min(tile_inn, _round_up(inn, 128))
    outn_pad = _round_up(outn, t_on)
    inn_pad = _round_up(inn, t_in)

    # Zero-padding is exact: padded x rows / M rows / inn columns contribute 0,
    # padded outn columns are sliced off below.
    xp = jnp.pad(x, ((0, n_pad - N), (0, 0), (0, inn_pad - inn)))
    X = xp.reshape(n_pad * inc, inn_pad).astype(compute_dtype)   # batch folded (free reshape)
    Mp = jnp.pad(M, ((0, outn_pad - outn), (0, inn_pad - inn))).astype(compute_dtype)
    Wt = jnp.asarray(W, jnp.float32).T                            # (outc, inc)

    bias = jnp.asarray(bias, jnp.float32)
    if bias.shape[1] == 1:                                        # '' or 'c' bias: no broadcast to (outc, outn)
        b_in = bias
        b_spec = pl.BlockSpec((outc, 1), lambda i, j, k: (0, 0))
    else:                                                         # 'nc' bias: tiled along outn
        b_in = jnp.pad(bias, ((0, 0), (0, outn_pad - outn)))
        b_spec = pl.BlockSpec((outc, t_on), lambda i, j, k: (0, j))

    grid = (n_pad // bn, outn_pad // t_on, inn_pad // t_in)       # reduction (inn) last
    kernel = functools.partial(_fgl_kernel, n_blk=bn, inc=inc, outc=outc)

    y_pad = pl.pallas_call(
        kernel,
        out_shape=jax.ShapeDtypeStruct((n_pad, outc, outn_pad), out_dtype),
        grid=grid,
        in_specs=[
            pl.BlockSpec((bn * inc, t_in), lambda i, j, k: (i, k)),   # X
            pl.BlockSpec((t_on, t_in), lambda i, j, k: (j, k)),       # M (dominant stream)
            pl.BlockSpec((outc, inc), lambda i, j, k: (0, 0)),        # W^T (tiny, invariant)
            b_spec,                                                   # bias
        ],
        out_specs=pl.BlockSpec((bn, outc, t_on), lambda i, j, k: (i, 0, j)),
        scratch_shapes=[pltpu.VMEM((bn * inc, t_on), jnp.float32)],
        compiler_params=pltpu.CompilerParams(
            dimension_semantics=("parallel", "parallel", "arbitrary"),
            vmem_limit_bytes=48 * 1024 * 1024),
    )(X, Mp, Wt, b_in)

    return y_pad[:N, :, :outn]


def build_fgl_params(inc, inn, outc, outn, adj_list, normalize=True,
                     bias_type='', key=None):
    """Deterministic parameter / buffer construction matching FGL_useless.__init__."""
    maxD = max(len(al) for al in adj_list)
    mask = np.zeros((outn, maxD), np.float32)
    A = np.zeros((outn, maxD), np.int32)          # padded with 0, masked out below
    for o, al in enumerate(adj_list):
        mask[o, :len(al)] = 1.0
        A[o, :len(al)] = np.asarray(al, np.int32)
    if normalize:
        mask = mask / (1e-8 + mask.sum(axis=1, keepdims=True))

    # Dense adjacency-weight matrix equivalent to (embedding gather * mask).sum(d)
    rows = jnp.repeat(jnp.arange(outn), maxD)
    cols = jnp.asarray(A).reshape(-1)
    vals = jnp.asarray(mask).reshape(-1)
    M = jnp.zeros((outn, inn), jnp.float32).at[rows, cols].add(vals)

    kw, kb = jax.random.split(key)
    W = (0.2 * jax.random.normal(kw, (inc, outc))).astype(jnp.float32)
    if bias_type == '':
        bias = jnp.zeros((outc, 1), jnp.float32)
    elif bias_type == 'c':
        bias = (0.2 * jax.random.normal(kb, (outc, 1))).astype(jnp.float32)
    elif bias_type == 'nc':
        bias = (0.2 * jax.random.normal(kb, (outc, outn))).astype(jnp.float32)
    else:
        raise NotImplementedError(bias_type)

    return dict(A=jnp.asarray(A), mask=jnp.asarray(mask), M=M, W=W, bias=bias)


def fgl_reference(x, A, mask, W, bias):
    """Pure-JAX transcription of the PyTorch forward (gather semantics)."""
    N, inc, inn = x.shape
    outn, maxD = A.shape
    emb_w = x.reshape(N * inc, inn).T                          # (inn, N*inc)
    emb = emb_w[A]                                             # (outn, maxD, N*inc)
    masked = mask[:, :, None] * emb
    pooled = masked.reshape(outn, maxD, N, inc).sum(axis=1)    # (outn, N, inc)
    almost_y = jnp.einsum('onc,ck->onk', pooled, W)            # (outn, N, outc)
    y = jnp.transpose(almost_y, (1, 2, 0))                     # (N, outc, outn)
    return y + bias


def _make_adj_list(rng, outn, inn, max_deg):
    adj = []
    for _ in range(outn):
        deg = int(rng.integers(1, max_deg + 1))
        adj.append(sorted(int(i) for i in rng.choice(inn, size=deg, replace=False)))
    return adj


if __name__ == "__main__":
    rng = np.random.default_rng(0)
    key = jax.random.PRNGKey(0)
    kp1, kx1, kp2, kx2 = jax.random.split(key, 4)

    # ---- test 1: small shapes, f32, '' bias (single-tile grid) ----
    N, inc, inn, outc, outn = 2, 4, 16, 8, 12
    adj_list = _make_adj_list(rng, outn, inn, 5)
    params = build_fgl_params(inc, inn, outc, outn, adj_list,
                              normalize=True, bias_type='', key=kp1)
    x = jax.random.normal(kx1, (N, inc, inn), dtype=jnp.float32)

    y = jax.block_until_ready(fgl_forward(x, params["M"], params["W"], params["bias"]))
    y_ref = fgl_reference(x, params["A"], params["mask"], params["W"], params["bias"])
    assert y.shape == (N, outc, outn), y.shape
    np.testing.assert_allclose(np.asarray(y), np.asarray(y_ref), rtol=1e-5, atol=1e-5)

    # ---- test 2: larger shapes, multi-tile grid (padding + k-accumulation), 'nc' bias ----
    N2, inc2, inn2, outc2, outn2 = 3, 4, 300, 8, 200
    adj_list2 = _make_adj_list(rng, outn2, inn2, 8)
    params2 = build_fgl_params(inc2, inn2, outc2, outn2, adj_list2,
                               normalize=True, bias_type='nc', key=kp2)
    x2 = jax.random.normal(kx2, (N2, inc2, inn2), dtype=jnp.float32)
    y2 = jax.block_until_ready(
        fgl_forward(x2, params2["M"], params2["W"], params2["bias"],
                    tile_outn=128, tile_inn=128))
    y2_ref = fgl_reference(x2, params2["A"], params2["mask"], params2["W"], params2["bias"])
    assert y2.shape == (N2, outc2, outn2), y2.shape
    np.testing.assert_allclose(np.asarray(y2), np.asarray(y2_ref), rtol=1e-5, atol=1e-5)

    # ---- test 3: bf16 inputs for the X/M streams (f32 accumulation), loose tolerance ----
    y3 = jax.block_until_ready(
        fgl_forward(x, params["M"], params["W"], params["bias"],
                    compute_dtype=jnp.bfloat16))
    np.testing.assert_allclose(np.asarray(y3), np.asarray(y_ref), rtol=3e-2, atol=3e-2)

    print("KERNEL_OK")
</pallas_src>

<mosaic_0001>
module attributes {stable_mosaic.version = 11 : i64} {
  func.func @_fgl_kernel(%arg0: i32, %arg1: i32, %arg2: i32, %arg3: memref<8x128xf32, #tpu.memory_space<vmem>>, %arg4: memref<128x128xf32, #tpu.memory_space<vmem>>, %arg5: memref<8x4xf32, #tpu.memory_space<vmem>>, %arg6: memref<8x1xf32, #tpu.memory_space<vmem>>, %arg7: memref<2x8x128xf32, #tpu.memory_space<vmem>>, %arg8: memref<8x128xf32, #tpu.memory_space<vmem>>) attributes {dimension_semantics = [#tpu.dimension_semantics<parallel>, #tpu.dimension_semantics<parallel>, #tpu.dimension_semantics<arbitrary>], iteration_bounds = array<i64: 1, 1, 1>, scalar_prefetch = 0 : i64, scratch_operands = 1 : i64, tpu.core_type = #tpu.core_type<tc>, window_params = [{transform_indices = @transform_0, window_bounds = array<i64: 8, 128>}, {transform_indices = @transform_1, window_bounds = array<i64: 128, 128>}, {pipeline_mode = #tpu.pipeline_mode<synchronous>, transform_indices = @transform_2, window_bounds = array<i64: 8, 4>}, {pipeline_mode = #tpu.pipeline_mode<synchronous>, transform_indices = @transform_3, window_bounds = array<i64: 8, 1>}, {transform_indices = @transform_4, window_bounds = array<i64: 2, 8, 128>}]} {
    %c0_i32 = arith.constant 0 : i32
    %0 = arith.cmpi eq, %arg2, %c0_i32 : i32
    %1 = arith.extui %0 : i1 to i32
    %c0_i32_0 = arith.constant 0 : i32
    %2 = arith.cmpi ne, %1, %c0_i32_0 : i32
    scf.if %2 {
      %cst_10 = arith.constant 0.000000e+00 : f32
      %12 = vector.broadcast %cst_10 : f32 to vector<8x128xf32>
      %c0_11 = arith.constant 0 : index
      %c0_12 = arith.constant 0 : index
      %13 = vector.load %arg8[%c0_11, %c0_12] : memref<8x128xf32, #tpu.memory_space<vmem>>, vector<8x128xf32>
      tpu.vector_store %arg8[%c0_11, %c0_12], %12 {strides = array<i32>} : memref<8x128xf32, #tpu.memory_space<vmem>>, vector<8x128xf32>,
    } else {
    }
    %c0 = arith.constant 0 : index
    %c0_1 = arith.constant 0 : index
    %3 = vector.load %arg8[%c0, %c0_1] : memref<8x128xf32, #tpu.memory_space<vmem>>, vector<8x128xf32>
    %c0_2 = arith.constant 0 : index
    %c0_3 = arith.constant 0 : index
    %4 = vector.load %arg3[%c0_2, %c0_3] : memref<8x128xf32, #tpu.memory_space<vmem>>, vector<8x128xf32>
    %c0_4 = arith.constant 0 : index
    %c0_5 = arith.constant 0 : index
    %5 = vector.load %arg4[%c0_4, %c0_5] : memref<128x128xf32, #tpu.memory_space<vmem>>, vector<128x128xf32>
    %cst = arith.constant dense<0.000000e+00> : vector<8x128xf32>
    %6 = tpu.matmul %4, %5, %cst {dimension_numbers = #tpu.dot_dimension_numbers<[1], [1], [0], [0], [0, 0, 1, 0], [], []>} : vector<8x128xf32>, vector<128x128xf32>, vector<8x128xf32> -> vector<8x128xf32>
    %7 = arith.addf %3, %6 : vector<8x128xf32>
    %c0_6 = arith.constant 0 : index
    %c0_7 = arith.constant 0 : index
    %8 = vector.load %arg8[%c0_6, %c0_7] : memref<8x128xf32, #tpu.memory_space<vmem>>, vector<8x128xf32>
    tpu.vector_store %arg8[%c0_6, %c0_7], %7 {strides = array<i32>} : memref<8x128xf32, #tpu.memory_space<vmem>>, vector<8x128xf32>,
    %c0_i32_8 = arith.constant 0 : i32
    %9 = arith.cmpi eq, %arg2, %c0_i32_8 : i32
    %10 = arith.extui %9 : i1 to i32
    %c0_i32_9 = arith.constant 0 : i32
    %11 = arith.cmpi ne, %10, %c0_i32_9 : i32
    scf.if %11 {
      %c0_10 = arith.constant 0 : index
      %c0_11 = arith.constant 0 : index
      %12 = vector.load %arg8[%c0_10, %c0_11] : memref<8x128xf32, #tpu.memory_space<vmem>>, vector<8x128xf32>
      %13 = vector.shape_cast %12 : vector<8x128xf32> to vector<2x4x128xf32>
      %c0_12 = arith.constant 0 : index
      %c0_13 = arith.constant 0 : index
      %14 = vector.load %arg5[%c0_12, %c0_13] : memref<8x4xf32, #tpu.memory_space<vmem>>, vector<8x4xf32>
      %15 = vector.shape_cast %14 : vector<8x4xf32> to vector<1x8x4xf32>
      %16 = vector.shape_cast %15 : vector<1x8x4xf32> to vector<1x8x4xf32>
      %17 = vector.broadcast %16 : vector<1x8x4xf32> to vector<2x8x4xf32>
      %cst_14 = arith.constant dense<0.000000e+00> : vector<2x8x128xf32>
      %18 = tpu.matmul %17, %13, %cst_14 {dimension_numbers = #tpu.dot_dimension_numbers<[2], [1], [1], [2], [0, 0, 0, 1, 1, 2], [0], [0]>} : vector<2x8x4xf32>, vector<2x4x128xf32>, vector<2x8x128xf32> -> vector<2x8x128xf32>
      %c0_15 = arith.constant 0 : index
      %c0_16 = arith.constant 0 : index
      %19 = vector.load %arg6[%c0_15, %c0_16] : memref<8x1xf32, #tpu.memory_space<vmem>>, vector<8x1xf32>
      %20 = vector.shape_cast %19 : vector<8x1xf32> to vector<1x8x1xf32>
      %21 = vector.broadcast %20 : vector<1x8x1xf32> to vector<2x8x128xf32>
      %22 = arith.addf %18, %21 : vector<2x8x128xf32>
      %c0_17 = arith.constant 0 : index
      %c0_18 = arith.constant 0 : index
      %c0_19 = arith.constant 0 : index
      %23 = vector.load %arg7[%c0_17, %c0_18, %c0_19] : memref<2x8x128xf32, #tpu.memory_space<vmem>>, vector<2x8x128xf32>
      tpu.vector_store %arg7[%c0_17, %c0_18, %c0_19], %22 {strides = array<i32>} : memref<2x8x128xf32, #tpu.memory_space<vmem>>, vector<2x8x128xf32>,
    } else {
    }
    return
  }
  func.func @transform_0(%arg0: i32, %arg1: i32, %arg2: i32) -> (i32, i32) {
    %c0_i32 = arith.constant 0 : i32
    return %arg0, %arg2 : i32, i32
  }
  func.func @transform_1(%arg0: i32, %arg1: i32, %arg2: i32) -> (i32, i32) {
    %c0_i32 = arith.constant 0 : i32
    return %arg1, %arg2 : i32, i32
  }
  func.func @transform_2(%arg0: i32, %arg1: i32, %arg2: i32) -> (i32, i32) {
    %c0_i32 = arith.constant 0 : i32
    %c0_i32_0 = arith.constant 0 : i32
    %c0_i32_1 = arith.constant 0 : i32
    return %c0_i32, %c0_i32_0 : i32, i32
  }
  func.func @transform_3(%arg0: i32, %arg1: i32, %arg2: i32) -> (i32, i32) {
    %c0_i32 = arith.constant 0 : i32
    %c0_i32_0 = arith.constant 0 : i32
    %c0_i32_1 = arith.constant 0 : i32
    return %c0_i32, %c0_i32_0 : i32, i32
  }
  func.func @transform_4(%arg0: i32, %arg1: i32, %arg2: i32) -> (i32, i32, i32) {
    %c0_i32 = arith.constant 0 : i32
    %c0_i32_0 = arith.constant 0 : i32
    return %arg0, %c0_i32, %arg1 : i32, i32, i32
  }
}

</mosaic_0001>

<bundles_post_ra>
// kernel: tpu_custom_call.1
= control target key start
LH: loop header
LB: loop body
LE: loop exit
PB: predicated region body
PF: predicated region fallthrough
CT: control target
= control target key end

     0   :  { %9 = vsyncpa [#allocation4], 0  ;;  %s275_s0 = inlined_call_operand.vmem [shape: f32[8,128], index: 0, kind: input, shape index: {}]   ;;  %s276_s1 = inlined_call_operand.hbm [shape: f32[128,128], index: 1, kind: input, shape index: {}]   ;;  %s277_s2 = inlined_call_operand.vmem [shape: f32[8,4], index: 2, kind: input, shape index: {}]   ;;  %s278_s3 = inlined_call_operand.vmem [shape: f32[8,1], index: 3, kind: input, shape index: {}]   ;;  %s279_s4 = inlined_call_operand.hbm [shape: f32[2,8,128], index: 4, kind: output, shape index: {}]  }
   0x1   :  { %10 = vsyncpa [#allocation5], 0  ;;  %s17_s17 = sshll.u32 %s276_s1, 4  ;;  %s224_s18 = smov [#allocation3]   ;;  %s18_s17 = int_to_ptr.hbm [resolvable:$true] %s17_s17 }
   0x2   :  { %s19_s19 = sshll.u32 %s224_s18, 4  ;;  %s225_s20 = smov 128   ;;  %s20_s19 = int_to_ptr.vmem [resolvable:$true] %s19_s19 }
   0x3   :  { %s226_s21 = smov 8  }
   0x4   :  { %25 = dma.hbm_to_vmem [thread:$0]  %s18_s17, 2048, %s20_s19, [#allocation4], %s225_s20, %s225_s20, %s226_s21  }
   0x5   :  { %220 = dma.done.wait [#allocation4], 2048  }
   0x6   :  { %221 = vsyncadd [#allocation4], 4294965248  ;;  %v56_v0 = vld [vmem:[#allocation3 + $0x78] sm:$0xff]  ;;  %v55_v1 = vld [vmem:[#allocation3 + $0x70] sm:$0xff]  ;;  %v227_v18 = vmov 0   ;;  %vm96_vm0 = vcmask 1043456  }
   0x7   :  { %57 = vmatpush.xpose.msra.mxu0 %v56_v0  ;;  %v54_v2 = vld [vmem:[#allocation3 + $0x68] sm:$0xff]  ;;  %v53_v3 = vld [vmem:[#allocation3 + $0x60] sm:$0xff]  ;;  %v52_v4 = vld [vmem:[#allocation3 + $0x58] sm:$0xff]  ;;  %171 = vset.pattern.permute.xlu0 %v227_v18  ;;  %vm92_vm1 = vcmask 31744   ;;  %s149_s29 = sshll.u32 %s279_s4, 4  ;;  %s150_s29 = int_to_ptr.hbm [resolvable:$true] %s149_s29 }
   0x8   :  { %v51_v5 = vld [vmem:[#allocation3 + $0x50] sm:$0xff]  ;;  %v50_v6 = vld [vmem:[#allocation3 + $0x48] sm:$0xff]  ;;  %v49_v7 = vld [vmem:[#allocation3 + $0x40] sm:$0xff] }
   0x9   :  { %v48_v8 = vld [vmem:[#allocation3 + $0x38] sm:$0xff]  ;;  %v47_v9 = vld [vmem:[#allocation3 + $0x30] sm:$0xff]  ;;  %v46_v10 = vld [vmem:[#allocation3 + $0x28] sm:$0xff] }
   0xa   :  { %v45_v11 = vld [vmem:[#allocation3 + $0x20] sm:$0xff]  ;;  %v44_v12 = vld [vmem:[#allocation3 + $0x18] sm:$0xff]  ;;  %v43_v13 = vld [vmem:[#allocation3 + $0x10] sm:$0xff] }
   0xb   :  { %58 = vmatpush.xpose.msra.mxu0 %v55_v1  ;;  %v42_v14 = vld [vmem:[#allocation3 + $0x8] sm:$0xff]  ;;  %v41_v15 = vld [vmem:[#allocation3] sm:$0xff] }
   0xc   :  { %v40_v16 = vld [vmem:[%s275_s0] sm:$0xff]  ;;  %s228_s0 = smov [#allocation6]  }
   0xd   :  { %v86_v17 = vld [vmem:[%s278_s3] sm:$0xff]  ;;  %s147_s3 = sshll.u32 %s228_s0, 4  ;;  %s148_s3 = int_to_ptr.vmem [resolvable:$true] %s147_s3 }
   0xe   :  { %89 = vperm.xlu0 %171, %v86_v17   ;;  %v85_v21 = vld [vmem:[%s277_s2] sm:$0xff] }
   0xf   :  { %59 = vmatpush.xpose.msra.mxu0 %v54_v2 }
  0x13   :  { %60 = vmatpush.xpose.msra.mxu0 %v53_v3 }
  0x17   :  { %61 = vmatpush.xpose.msra.mxu0 %v52_v4 }
  0x1b   :  { %62 = vmatpush.xpose.msra.mxu0 %v51_v5 }
  0x1f   :  { %63 = vmatpush.xpose.msra.mxu0 %v50_v6 }
  0x23   :  { %64 = vmatpush.xpose.msra.mxu0 %v49_v7 }
  0x27   :  { %65 = vmatpush.xpose.msra.mxu0 %v48_v8 }
  0x2b   :  { %66 = vmatpush.xpose.msra.mxu0 %v47_v9 }
  0x2f   :  { %67 = vmatpush.xpose.msra.mxu0 %v46_v10 }
  0x33   :  { %68 = vmatpush.xpose.msra.mxu0 %v45_v11 }
  0x37   :  { %69 = vmatpush.xpose.msra.mxu0 %v44_v12 }
  0x3b   :  { %70 = vmatpush.xpose.msra.mxu0 %v43_v13 }
  0x3f   :  { %71 = vmatpush.xpose.msra.mxu0 %v42_v14 }
  0x43   :  { %72 = vmatpush.xpose.msra.mxu0 %v41_v15 }
  0x46   :  { %73 = vmatmul.f32.vlgmr.msra.gmra.mxu0 %v40_v16 }
  0x80   :  { %v90_v22 = vpop.permute.xlu0 %89 }
  0xc3   :  { %v74_v19 = vpop.f32.mrf.mxu0 }
  0xc4   :  { %v84_v20 = vrot.slane %v74_v19, 4  ;;  %162 = vmatpush.msk.msra.mxu1 %vm96_vm0, %v74_v19 }
  0xc5   :  { %163 = vmatmul.msk.f32.vlgmr.msra.gmra.mxu1 %vm92_vm1, %v85_v21 }
  0xc6   :  { %164 = vmatpush.msk.msra.mxu2 %vm96_vm0, %v84_v20 }
  0xc7   :  { %165 = vmatmul.msk.f32.vlgmr.msra.gmra.mxu2 %vm92_vm1, %v85_v21 }
 0x142   :  { %v116_v23 = vpop.f32.mrf.mxu1 }
 0x143   :  { %v117_v24 = vadd.f32 %v116_v23, %v90_v22 }
 0x145   :  { %141 = vst [vmem:[#allocation6] sm:$0xff] %v117_v24 }
 0x14a   :  { %v138_v25 = vpop.f32.mrf.mxu2 }
 0x14b   :  { %v139_v26 = vadd.f32 %v138_v25, %v90_v22 }
 0x14d   :  { %142 = vst [vmem:[#allocation6 + $0x8] sm:$0xff] %v139_v26 }
 0x14e   :  { %155 = dma.vmem_to_hbm [thread:$0]  %s148_s3, 256, %s150_s29, [#allocation5], %s225_s20, %s225_s20, %s226_s21  }
 0x14f   :  { %222 = dma.done.wait [#allocation5], 256  }
 0x150   :  { %223 = vsyncadd [#allocation5], 4294967040 }
 0x151   :  { %160 = vsyncpa [#allocation4], 1 }
 0x152   :  { %161 = vsyncpa [#allocation5], 1 }

</bundles_post_ra>
